<compile_context>
chip_gen: v7x
topology: tpu7x:2x2x1
jax: 0.10.0
libtpu: 0.0.40
codegen_flags: <defaults>
</compile_context>

<pallas_src>
import jax
import jax.numpy as jnp
from jax.experimental import pallas as pl
from jax.experimental.pallas import tpu as pltpu


def _phase_conv(x_ref, h_ref, w_ref):
    """Phase-decomposed ConvTranspose2d(3x3, s=2, p=1, op=1) for one row tile.

    x_ref : (1, TH, W+1, Cin)  input rows [t*TH, (t+1)*TH)  (one zero column on the right)
    h_ref : (1, 1,  W+1, Cin)  halo row   (t+1)*TH          (zero row past the bottom edge)
    w_ref : (4, Cin, 4*Cout)   per-view weights; output columns grouped [EE, EO, OE, OO] x Cout
    returns acc: (TH*W, 4*Cout) f32
    """
    _, TH, Wp1, Cin = x_ref.shape
    W = Wp1 - 1

    xa = x_ref[0]                                             # rows r     (TH, W+1, Cin)
    if TH > 1:
        xb = jnp.concatenate([xa[1:], h_ref[0]], axis=0)      # rows r+1   (TH, W+1, Cin)
    else:
        xb = h_ref[0]

    # Four shifted views used by the four output phases (halo-free within the tile).
    x00 = xa[:, :W, :].reshape(TH * W, Cin)
    x01 = xa[:, 1:, :].reshape(TH * W, Cin)
    x10 = xb[:, :W, :].reshape(TH * W, Cin)
    x11 = xb[:, 1:, :].reshape(TH * W, Cin)

    acc = jnp.dot(x00, w_ref[0], preferred_element_type=jnp.float32)
    acc = acc + jnp.dot(x01, w_ref[1], preferred_element_type=jnp.float32)
    acc = acc + jnp.dot(x10, w_ref[2], preferred_element_type=jnp.float32)
    acc = acc + jnp.dot(x11, w_ref[3], preferred_element_type=jnp.float32)
    return acc, TH, W


def _stats_kernel(x_ref, h_ref, w_ref, psum_ref):
    """Pass 1: conv recompute -> per-tile [sum, sum_sq] partial BN statistics (no conv output)."""
    acc, _, _ = _phase_conv(x_ref, h_ref, w_ref)
    C4 = acc.shape[1]
    s = jnp.sum(acc, axis=0, keepdims=True)                   # (1, C4)
    q = jnp.sum(acc * acc, axis=0, keepdims=True)             # (1, C4)
    psum_ref[...] = jnp.concatenate([s, q], axis=0).reshape(1, 1, 2, C4)


def _bn_relu_out_kernel(x_ref, h_ref, w_ref, scale_ref, shift_ref, y_ref):
    """Pass 2: conv recompute fused with BN affine + ReLU; single full-size output store."""
    acc, TH, W = _phase_conv(x_ref, h_ref, w_ref)
    C4 = acc.shape[1]
    y = jnp.maximum(acc * scale_ref[...] + shift_ref[...], 0.0)
    y_ref[0] = y.reshape(TH, W, C4)


def _vmem_budget_and_limit():
    """(per-step tile budget, vmem_limit_bytes) derived from physical VMEM (v7x: 64 MiB)."""
    try:
        cap = int(getattr(pltpu.get_tpu_info(), "vmem_capacity_bytes"))
    except Exception:
        cap = 64 << 20
    limit = max(16 << 20, min(cap - (16 << 20), 100 << 20))   # leave headroom below physical VMEM
    return limit // 2, limit


def _choose_row_tile(H, W, Cin, C4, budget_bytes):
    """Largest divisor of H whose double-buffered per-step footprint fits the budget.

    Footprint counts both pipeline buffers of every streamed operand; it ignores lane/sublane
    padding for very narrow channel counts (conservative enough at production channel widths).
    """
    def footprint(th):
        in_main = th * (W + 1) * Cin * 4
        halo = (W + 1) * Cin * 4
        weights = 4 * Cin * C4 * 4
        out_tile = th * W * C4 * 4
        return 2 * (in_main + halo + weights + out_tile) + (1 << 16)

    best = 1
    for th in range(1, H + 1):
        if H % th == 0 and footprint(th) <= budget_bytes:
            best = th
    return best


def upsampler_block(x_nchw, w_pt, bias, gamma, beta, eps=1e-3, row_tile=None):
    """x_nchw: (N, Cin, H, W);  w_pt: (Cin, Cout, 3, 3) PyTorch ConvTranspose2d layout.

    Returns (N, Cout, 2H, 2W), matching UpsamplerBlock.forward() (training-mode BN statistics).
    """
    N, Cin, H, W = x_nchw.shape
    Cout = w_pt.shape[1]
    C4 = 4 * Cout
    OH, OW = 2 * H, 2 * W

    # ---- layout glue: ONE padded input copy (1 zero row bottom, 1 zero col right) --------------
    x = jnp.transpose(x_nchw, (0, 2, 3, 1)).astype(jnp.float32)       # NHWC
    xp = jnp.pad(x, ((0, 0), (0, 1), (0, 1), (0, 0)))                 # (N, H+1, W+1, Cin)

    # Flipped ConvTranspose weights: wf[kh, kw, ci, co] = w_pt[ci, co, 2-kh, 2-kw]
    wf = jnp.transpose(w_pt[:, :, ::-1, ::-1], (2, 3, 0, 1)).astype(jnp.float32)
    z = jnp.zeros((Cin, Cout), jnp.float32)
    # Phase taps (output columns ordered [EE, EO, OE, OO]):
    #   y[2r  ,2c  ] = x[r,c]@wf11
    #   y[2r  ,2c+1] = x[r,c]@wf10 + x[r,c+1]@wf12
    #   y[2r+1,2c  ] = x[r,c]@wf01 + x[r+1,c]@wf21
    #   y[2r+1,2c+1] = x[r,c]@wf00 + x[r,c+1]@wf02 + x[r+1,c]@wf20 + x[r+1,c+1]@wf22
    w00 = jnp.concatenate([wf[1, 1], wf[1, 0], wf[0, 1], wf[0, 0]], axis=1)   # view x[r,   c  ]
    w01 = jnp.concatenate([z,        wf[1, 2], z,        wf[0, 2]], axis=1)   # view x[r,   c+1]
    w10 = jnp.concatenate([z,        z,        wf[2, 1], wf[2, 0]], axis=1)   # view x[r+1, c  ]
    w11 = jnp.concatenate([z,        z,        z,        wf[2, 2]], axis=1)   # view x[r+1, c+1]
    w_packed = jnp.stack([w00, w01, w10, w11], axis=0)                        # (4, Cin, 4*Cout)

    # Conv bias dropped: a per-channel constant is exactly removed by training-mode BN mean
    # subtraction and leaves the variance unchanged.
    del bias

    budget, vmem_limit = _vmem_budget_and_limit()
    TH = row_tile if row_tile is not None else _choose_row_tile(H, W, Cin, C4, budget)
    assert H % TH == 0, (H, TH)
    T = H // TH

    cparams = pltpu.CompilerParams(
        dimension_semantics=("parallel", "parallel"),     # no resident state -> v7x megacore OK
        vmem_limit_bytes=vmem_limit)

    in_specs = [
        pl.BlockSpec((1, TH, W + 1, Cin), lambda n, t: (n, t, 0, 0)),
        # 1-row halo on the SAME padded array (row (t+1)*TH; last tile hits the zero pad row).
        pl.BlockSpec((1, 1, W + 1, Cin), lambda n, t: (n, (t + 1) * TH, 0, 0)),
        pl.BlockSpec((4, Cin, C4), lambda n, t: (0, 0, 0)),
    ]

    # ---- pass 1: conv recompute -> per-(image, row-tile) partial BN statistics only ------------
    psums = pl.pallas_call(
        _stats_kernel,
        out_shape=jax.ShapeDtypeStruct((N, T, 2, C4), jnp.float32),
        grid=(N, T),
        in_specs=in_specs,
        out_specs=pl.BlockSpec((1, 1, 2, C4), lambda n, t: (n, t, 0, 0)),
        compiler_params=cparams,
    )(xp, xp, w_packed)

    # ---- finalize batch statistics (tiny per-channel math; Chan per-tile combination) ----------
    m = float(TH * W)                                      # elements per (tile, phase) column
    s = psums[:, :, 0, :].reshape(N, T, 4, Cout)
    q = psums[:, :, 1, :].reshape(N, T, 4, Cout)
    count = float(N * OH * OW)                             # == N * T * 4 * m
    mean = s.sum(axis=(0, 1, 2)) / count                   # (Cout,)
    g_mean = s / m                                         # per-(tile, phase) means
    m2 = (q - s * g_mean).sum(axis=(0, 1, 2)) + (m * (g_mean - mean) ** 2).sum(axis=(0, 1, 2))
    var = m2 / count                                       # biased (training-mode BN)
    scale = gamma.astype(jnp.float32) * jax.lax.rsqrt(var + eps)
    shift = beta.astype(jnp.float32) - mean * scale
    scale_c4 = jnp.tile(scale, 4).reshape(1, C4)           # phase-grouped column order
    shift_c4 = jnp.tile(shift, 4).reshape(1, C4)

    # ---- pass 2: conv recompute + fused BN affine + ReLU -> single output store ----------------
    y_pg = pl.pallas_call(
        _bn_relu_out_kernel,
        out_shape=jax.ShapeDtypeStruct((N, H, W, C4), jnp.float32),
        grid=(N, T),
        in_specs=in_specs + [
            pl.BlockSpec((1, C4), lambda n, t: (0, 0)),
            pl.BlockSpec((1, C4), lambda n, t: (0, 0)),
        ],
        out_specs=pl.BlockSpec((1, TH, W, C4), lambda n, t: (n, t, 0, 0)),
        compiler_params=cparams,
    )(xp, xp, w_packed, scale_c4, shift_c4)

    # ---- de-interleave phases and return NCHW (single wrapper transpose pass) ------------------
    y = y_pg.reshape(N, H, W, 2, 2, Cout)          # (n, r, c, pr, pc, co)
    y = jnp.transpose(y, (0, 5, 1, 3, 2, 4))       # (n, co, r, pr, c, pc)
    return y.reshape(N, Cout, OH, OW)


if __name__ == "__main__":
    key = jax.random.PRNGKey(0)
    k1, k2, k3, k4, k5 = jax.random.split(key, 5)

    N, Cin, Cout, H, W = 2, 8, 4, 16, 16
    x = jax.random.normal(k1, (N, Cin, H, W), jnp.float32)
    # PyTorch ConvTranspose2d weight layout: (in, out, kH, kW).
    w_pt = 0.1 * jax.random.normal(k2, (Cin, Cout, 3, 3), jnp.float32)
    bias = 0.1 * jax.random.normal(k3, (Cout,), jnp.float32)
    gamma = 1.0 + 0.1 * jax.random.normal(k4, (Cout,), jnp.float32)
    beta = 0.1 * jax.random.normal(k5, (Cout,), jnp.float32)

    # Reference: XLA dilated conv (== ConvTranspose2d) + bias + training-mode BN + ReLU.
    w_ref = jnp.transpose(w_pt, (1, 0, 2, 3))[:, :, ::-1, ::-1]
    conv_ref = jax.lax.conv_general_dilated(
        x, w_ref, window_strides=(1, 1), padding=((1, 2), (1, 2)),
        lhs_dilation=(2, 2),
        dimension_numbers=("NCHW", "OIHW", "NCHW")) + bias.reshape(1, -1, 1, 1)
    mean = conv_ref.mean(axis=(0, 2, 3)).reshape(1, -1, 1, 1)
    var = ((conv_ref - mean) ** 2).mean(axis=(0, 2, 3)).reshape(1, -1, 1, 1)
    ref = jnp.maximum((conv_ref - mean) / jnp.sqrt(var + 1e-3)
                      * gamma.reshape(1, -1, 1, 1) + beta.reshape(1, -1, 1, 1), 0.0)

    # row_tile=8 exercises the multi-tile halo path (halo row comes from real data for tile 0);
    # row_tile=None exercises the VMEM-budgeted auto-tile path.
    for rt in (8, None):
        out = jax.block_until_ready(upsampler_block(x, w_pt, bias, gamma, beta, row_tile=rt))
        assert out.shape == (N, Cout, 2 * H, 2 * W)
        assert jnp.allclose(out, ref, atol=1e-3, rtol=1e-3), float(jnp.max(jnp.abs(out - ref)))
    print("KERNEL_OK")
</pallas_src>

<mosaic_0001>
module attributes {stable_mosaic.version = 11 : i64} {
  func.func @_stats_kernel(%arg0: i32, %arg1: i32, %arg2: memref<1x8x17x8xf32, #tpu.memory_space<vmem>>, %arg3: memref<1x1x17x8xf32, #tpu.memory_space<vmem>>, %arg4: memref<4x8x16xf32, #tpu.memory_space<vmem>>, %arg5: memref<1x1x2x16xf32, #tpu.memory_space<vmem>>) attributes {dimension_semantics = [#tpu.dimension_semantics<parallel>, #tpu.dimension_semantics<parallel>], iteration_bounds = array<i64: 2, 2>, scalar_prefetch = 0 : i64, scratch_operands = 0 : i64, tpu.core_type = #tpu.core_type<tc>, window_params = [{transform_indices = @transform_0, window_bounds = array<i64: 1, 8, 17, 8>}, {transform_indices = @transform_1, window_bounds = array<i64: 1, 1, 17, 8>}, {pipeline_mode = #tpu.pipeline_mode<synchronous>, transform_indices = @transform_2, window_bounds = array<i64: 4, 8, 16>}, {transform_indices = @transform_3, window_bounds = array<i64: 1, 1, 2, 16>}]} {
    %c0 = arith.constant 0 : index
    %c0_0 = arith.constant 0 : index
    %c0_1 = arith.constant 0 : index
    %c0_2 = arith.constant 0 : index
    %0 = vector.load %arg2[%c0, %c0_0, %c0_1, %c0_2] : memref<1x8x17x8xf32, #tpu.memory_space<vmem>>, vector<1x8x17x8xf32>
    %1 = vector.shape_cast %0 : vector<1x8x17x8xf32> to vector<8x17x8xf32>
    %2 = vector.extract_strided_slice %1 {offsets = [1, 0, 0], sizes = [7, 17, 8], strides = [1, 1, 1]} : vector<8x17x8xf32> to vector<7x17x8xf32>
    %c0_3 = arith.constant 0 : index
    %c0_4 = arith.constant 0 : index
    %c0_5 = arith.constant 0 : index
    %c0_6 = arith.constant 0 : index
    %3 = vector.load %arg3[%c0_3, %c0_4, %c0_5, %c0_6] : memref<1x1x17x8xf32, #tpu.memory_space<vmem>>, vector<1x1x17x8xf32>
    %4 = vector.shape_cast %3 : vector<1x1x17x8xf32> to vector<1x17x8xf32>
    %5 = tpu.concatenate %2, %4 in 0 : vector<7x17x8xf32>, vector<1x17x8xf32> -> vector<8x17x8xf32>
    %6 = vector.extract_strided_slice %1 {offsets = [0, 0, 0], sizes = [8, 16, 8], strides = [1, 1, 1]} : vector<8x17x8xf32> to vector<8x16x8xf32>
    %7 = vector.shape_cast %6 : vector<8x16x8xf32> to vector<128x8xf32>
    %8 = vector.extract_strided_slice %1 {offsets = [0, 1, 0], sizes = [8, 16, 8], strides = [1, 1, 1]} : vector<8x17x8xf32> to vector<8x16x8xf32>
    %9 = vector.shape_cast %8 : vector<8x16x8xf32> to vector<128x8xf32>
    %10 = vector.extract_strided_slice %5 {offsets = [0, 0, 0], sizes = [8, 16, 8], strides = [1, 1, 1]} : vector<8x17x8xf32> to vector<8x16x8xf32>
    %11 = vector.shape_cast %10 : vector<8x16x8xf32> to vector<128x8xf32>
    %12 = vector.extract_strided_slice %5 {offsets = [0, 1, 0], sizes = [8, 16, 8], strides = [1, 1, 1]} : vector<8x17x8xf32> to vector<8x16x8xf32>
    %13 = vector.shape_cast %12 : vector<8x16x8xf32> to vector<128x8xf32>
    %c0_7 = arith.constant 0 : index
    %c0_8 = arith.constant 0 : index
    %c0_9 = arith.constant 0 : index
    %14 = vector.load %arg4[%c0_7, %c0_8, %c0_9] : memref<4x8x16xf32, #tpu.memory_space<vmem>>, vector<1x8x16xf32>
    %15 = vector.shape_cast %14 : vector<1x8x16xf32> to vector<8x16xf32>
    %cst = arith.constant dense<0.000000e+00> : vector<128x16xf32>
    %16 = tpu.matmul %7, %15, %cst {dimension_numbers = #tpu.dot_dimension_numbers<[1], [0], [0], [1], [0, 0, 1, 1], [], []>} : vector<128x8xf32>, vector<8x16xf32>, vector<128x16xf32> -> vector<128x16xf32>
    %c1 = arith.constant 1 : index
    %c0_10 = arith.constant 0 : index
    %c0_11 = arith.constant 0 : index
    %17 = vector.load %arg4[%c1, %c0_10, %c0_11] : memref<4x8x16xf32, #tpu.memory_space<vmem>>, vector<1x8x16xf32>
    %18 = vector.shape_cast %17 : vector<1x8x16xf32> to vector<8x16xf32>
    %cst_12 = arith.constant dense<0.000000e+00> : vector<128x16xf32>
    %19 = tpu.matmul %9, %18, %cst_12 {dimension_numbers = #tpu.dot_dimension_numbers<[1], [0], [0], [1], [0, 0, 1, 1], [], []>} : vector<128x8xf32>, vector<8x16xf32>, vector<128x16xf32> -> vector<128x16xf32>
    %20 = arith.addf %16, %19 : vector<128x16xf32>
    %c2 = arith.constant 2 : index
    %c0_13 = arith.constant 0 : index
    %c0_14 = arith.constant 0 : index
    %21 = vector.load %arg4[%c2, %c0_13, %c0_14] : memref<4x8x16xf32, #tpu.memory_space<vmem>>, vector<1x8x16xf32>
    %22 = vector.shape_cast %21 : vector<1x8x16xf32> to vector<8x16xf32>
    %cst_15 = arith.constant dense<0.000000e+00> : vector<128x16xf32>
    %23 = tpu.matmul %11, %22, %cst_15 {dimension_numbers = #tpu.dot_dimension_numbers<[1], [0], [0], [1], [0, 0, 1, 1], [], []>} : vector<128x8xf32>, vector<8x16xf32>, vector<128x16xf32> -> vector<128x16xf32>
    %24 = arith.addf %20, %23 : vector<128x16xf32>
    %c3 = arith.constant 3 : index
    %c0_16 = arith.constant 0 : index
    %c0_17 = arith.constant 0 : index
    %25 = vector.load %arg4[%c3, %c0_16, %c0_17] : memref<4x8x16xf32, #tpu.memory_space<vmem>>, vector<1x8x16xf32>
    %26 = vector.shape_cast %25 : vector<1x8x16xf32> to vector<8x16xf32>
    %cst_18 = arith.constant dense<0.000000e+00> : vector<128x16xf32>
    %27 = tpu.matmul %13, %26, %cst_18 {dimension_numbers = #tpu.dot_dimension_numbers<[1], [0], [0], [1], [0, 0, 1, 1], [], []>} : vector<128x8xf32>, vector<8x16xf32>, vector<128x16xf32> -> vector<128x16xf32>
    %28 = arith.addf %24, %27 : vector<128x16xf32>
    %cst_19 = arith.constant dense<0.000000e+00> : vector<16xf32>
    %29 = vector.multi_reduction <add>, %28, %cst_19 [0] : vector<128x16xf32> to vector<16xf32>
    %30 = vector.shape_cast %29 : vector<16xf32> to vector<1x16xf32>
    %31 = arith.mulf %28, %28 : vector<128x16xf32>
    %cst_20 = arith.constant dense<0.000000e+00> : vector<16xf32>
    %32 = vector.multi_reduction <add>, %31, %cst_20 [0] : vector<128x16xf32> to vector<16xf32>
    %33 = vector.shape_cast %32 : vector<16xf32> to vector<1x16xf32>
    %34 = tpu.concatenate %30, %33 in 0 : vector<1x16xf32>, vector<1x16xf32> -> vector<2x16xf32>
    %35 = vector.shape_cast %34 : vector<2x16xf32> to vector<1x1x2x16xf32>
    %c0_21 = arith.constant 0 : index
    %c0_22 = arith.constant 0 : index
    %c0_23 = arith.constant 0 : index
    %c0_24 = arith.constant 0 : index
    %36 = vector.load %arg5[%c0_21, %c0_22, %c0_23, %c0_24] : memref<1x1x2x16xf32, #tpu.memory_space<vmem>>, vector<1x1x2x16xf32>
    tpu.vector_store %arg5[%c0_21, %c0_22, %c0_23, %c0_24], %35 {strides = array<i32>} : memref<1x1x2x16xf32, #tpu.memory_space<vmem>>, vector<1x1x2x16xf32>,
    return
  }
  func.func @transform_0(%arg0: i32, %arg1: i32) -> (i32, i32, i32, i32) {
    %c0_i32 = arith.constant 0 : i32
    %c0_i32_0 = arith.constant 0 : i32
    %c0_i32_1 = arith.constant 0 : i32
    return %arg0, %arg1, %c0_i32, %c0_i32_0 : i32, i32, i32, i32
  }
  func.func @transform_1(%arg0: i32, %arg1: i32) -> (i32, i32, i32, i32) {
    %c1_i32 = arith.constant 1 : i32
    %0 = arith.addi %arg1, %c1_i32 : i32
    %c8_i32 = arith.constant 8 : i32
    %1 = arith.muli %0, %c8_i32 : i32
    %c0_i32 = arith.constant 0 : i32
    %c0_i32_0 = arith.constant 0 : i32
    %c0_i32_1 = arith.constant 0 : i32
    return %arg0, %1, %c0_i32, %c0_i32_0 : i32, i32, i32, i32
  }
  func.func @transform_2(%arg0: i32, %arg1: i32) -> (i32, i32, i32) {
    %c0_i32 = arith.constant 0 : i32
    %c0_i32_0 = arith.constant 0 : i32
    %c0_i32_1 = arith.constant 0 : i32
    %c0_i32_2 = arith.constant 0 : i32
    return %c0_i32, %c0_i32_0, %c0_i32_1 : i32, i32, i32
  }
  func.func @transform_3(%arg0: i32, %arg1: i32) -> (i32, i32, i32, i32) {
    %c0_i32 = arith.constant 0 : i32
    %c0_i32_0 = arith.constant 0 : i32
    %c0_i32_1 = arith.constant 0 : i32
    return %arg0, %arg1, %c0_i32, %c0_i32_0 : i32, i32, i32, i32
  }
}

</mosaic_0001>

<bundles_post_ra>
// kernel: tpu_custom_call.1
= control target key start
LH: loop header
LB: loop body
LE: loop exit
PB: predicated region body
PF: predicated region fallthrough
CT: control target
= control target key end

     0   :  { %8 = vsyncpa [#allocation3], 0  ;;  %s2188_s0 = inlined_call_operand.vmem [shape: f32[2,17,17,8], index: 0, kind: input, shape index: {}]   ;;  %s2189_s1 = inlined_call_operand.vmem [shape: f32[2,17,17,8], index: 1, kind: input, shape index: {}]   ;;  %s2190_s2 = inlined_call_operand.vmem [shape: f32[4,8,16], index: 2, kind: input, shape index: {}]   ;;  %s2191_s3 = inlined_call_operand.hbm [shape: f32[2,2,2,16], index: 3, kind: output, shape index: {}]  }
   0x1   :  { %10 = vsyncpa [#allocation3 + $0x1], 0  ;;  %s1781_s12 = smov 0   ;;  %s1783_s13 = smov 0  }
   0x2   :  { %s1785_s14 = smov 0   ;;  %s1787_s15 = smov 0  }
   0x3   :  { %s1789_s16 = smov 0   ;;  %s1791_s17 = smov 0  }
   0x4   :  { %s1793_s18 = smov 0   ;;  %s1795_s19 = smov 0  }
   0x5 LB: > { %s1280_s20 = sadd.s32 4294967295, %s1758_s19   ;;  %s1281_s21 = sadd.s32 4294967294, %s1758_s19   ;;  %s1758_s19 = sphi %s1795_s19, %s16_s19   ;;  %s1754_s18 = sphi %s1793_s18, %s2201_s18   ;;  %s1750_s17 = sphi %s1791_s17, %s2200_s17   ;;  %s1746_s16 = sphi %s1789_s16, %s2199_s16   ;;  %s1742_s15 = sphi %s1787_s15, %s2198_s15   ;;  %s1738_s14 = sphi %s1785_s14, %s2197_s14   ;;  %s1734_s13 = sphi %s1783_s13, %s2196_s13   ;;  %s1730_s12 = sphi %s1781_s12, %s2195_s12  }
   0x6   : > { %s25_s22 = sadd.s32 1, %s1750_s17  ;;  %s28_s23 = sadd.s32 1, %s1754_s18 }
   0x7   : > { %p26_p0 = scmp.ge.s32.totalorder %s25_s22, 2  ;;  %p128_p1 = scmp.ne.s32.totalorder %s1738_s14, %s1734_s13 }
   0x8   : > { %p129_p2 = scmp.eq.s32.totalorder %s1280_s20, 3  ;;  %p134_p5 = scmp.ne.s32.totalorder %s1734_s13, %s1730_s12 }
   0x9   : > { %s2203_s22 = smov (%p26_p0, %s25_s22), 0  ;;  %s2205_s23 = smov (!%p26_p0, %s28_s23), %s1754_s18 }
   0xa   : > { %s114_s24 = ssub.s32 %s1750_s17, %s2203_s22  ;;  %p1832_p3 = por %p129_p2, %p128_p1 }
   0xb   : > { %p30_p4 = scmp.ge.s32.totalorder %s2205_s23, 2  ;;  %p135_p6 = scmp.eq.s32.totalorder %s1281_s21, 3 }
   0xc   : > { %p1286_p7 = scmp.ge.s32.totalorder %s1758_s19, 1  ;;  %p196_p9 = scmp.lt.s32.totalorder %s1758_s19, 5 }
   0xd   : > { %s2207_s23 = smov (%p30_p4, %s2205_s23), 0  ;;  %p1841_p8 = por %p135_p6, %p134_p5 }
   0xe   : > { %s113_s27 = ssub.s32 %s1754_s18, %s2207_s23  ;;  %s118_s28 = sadd.s32 1, %s1738_s14 }
   0xf   : > { %s115_s29 = sor.u32 %s114_s24, %s113_s27  ;;  %p197_p10 = pnand %p1286_p7, %p196_p9 }
  0x10   : > { %p116_p11 = scmp.eq.s32.totalorder %s115_s29, 0  ;;  %v1325_v0 = vld [vmem:[%s2190_s2 + $0x10] sm:$0xff] (!%p197_p10)  ;;  %s1856_s6 = sshll.u32 (!%p197_p10), %s1742_s15, 3  ;;  %v1292_v1 = vld [vmem:[%s2190_s2 + $0x8] sm:$0xff] (!%p197_p10)  ;;  %v375_v2 = vld [vmem:[%s2190_s2] sm:$0xff] (!%p197_p10)  ;;  %vm378_vm0 = vcmask (!%p197_p10), 64512  }
  0x11   : > { %200 = sbr.rel (%p197_p10) target bundleno = 347 (0x15b), region = 32  ;;  %p247_p12 = scmp.lt.s32.totalorder (!%p197_p10), %s1746_s16, 1  ;;  %1490 = vmatprep.subr.mxu0 (!%p197_p10), %v1325_v0  ;;  %1438 = vmatprep.subr.mxu1 (!%p197_p10), %v1292_v1  ;;  %v1342_v3 = vld [vmem:[%s2190_s2 + $0x18] sm:$0xff] (!%p197_p10)  ;;  %vm326_vm1 = vcmask (!%p197_p10), 1046528   ;;  %vm1067_vm2 = vcmask (!%p197_p10), 130048   ;;  %vm1158_vm3 = vcmask (!%p197_p10), 1040384  }
  0x12   : > { %s1850_s30 = scalar_select %p116_p11, %s1738_s14, %s118_s28  }
  0x13   : > { %p249_p13 = scmp.lt.s32.totalorder (!%p197_p10), %s1856_s6, 16  ;;  %1491 = vmatpush3.msra.mxu0 (!%p197_p10), %v1325_v0  ;;  %1439 = vmatpush3.msra.mxu1 (!%p197_p10), %v1292_v1  ;;  %s1369_s9 = sadd.s32 (!%p197_p10), 8, %s1856_s6  ;;  %vm1160_vm4 = vcmask (!%p197_p10), 123904  }
  0x14   : > { %1464 = vmatprep.subr.mxu1 (!%p197_p10), %v375_v2  ;;  %1516 = vmatprep.subr.mxu0 (!%p197_p10), %v1342_v3  ;;  %p1915_p0 = scmp.lt.s32.totalorder (!%p197_p10), %s1369_s9, 16 }
  0x18   : > { %s1870_s21 = scalar_select %p247_p12, %s1746_s16, 1 }
  0x19   : > { %s250_s24 = scalar_select %p249_p13, %s1856_s6, 16 }
  0x1a   : > { %s1591_s27 = smul.u32 51, %s1870_s21  ;;  %s2209_s9 = smov (!%p1915_p0, %s1369_s9), 16 }
  0x1b   : > { %s1590_s28 = smul.u32 3, %s250_s24 }
  0x1c   : > { %s1592_s6 = smul.u32 3, %s2209_s9 }
  0x1d   : > { %s253_s29 = sadd.s32 %s1591_s27, %s1590_s28  ;;  %s238_s28 = sand.u32 1, %s1734_s13  }
  0x1e   : > { %s1289_s4 = sshll.u32 %s253_s29, 3  ;;  %s270_s11 = sadd.s32 %s1592_s6, %s1591_s27 }
  0x1f   : > { %s1879_s8 = scalar_lea.vmem %s2188_s0, %s1289_s4  ;;  %s1291_s20 = sshll.u32 %s270_s11, 3 }
  0x20   : > { %v1882_v4 = vld [vmem:[%s1879_s8 + $0x18] sm:$0xff]  ;;  %v1885_v5 = vld [vmem:[%s1879_s8 + $0x20] sm:$0xff]  ;;  %v1896_v9 = vld [vmem:[%s1879_s8 + $0x8] sm:$0xff]  ;;  %s2017_s27 = scalar_lea.vmem %s2189_s1, %s1291_s20  ;;  %s1287_s29 = sshll.u32 %s238_s28, 1 }
  0x21   : > { %v1888_v6 = vld [vmem:[%s1879_s8] sm:$0xff]  ;;  %v332_v7 = vrot.slane %v1882_v4, 1  ;;  %1492 = vmatprep.mubr.msk.f32.mxu0 %vm378_vm0, %v1882_v4  ;;  %v333_v8 = vrot.slane %v1885_v5, 1  ;;  %v277_v11 = vld [vmem:[%s1879_s8 + $0x10] sm:$0x1]  ;;  %v328_v12 = vrot.slane %v1896_v9, 1 }
  0x22   : > { %v327_v10 = vrot.slane %v1888_v6, 1  ;;  %1493 = vmatmul.mubr.msk.f32.vlgmr.msra.gmra.mrb[0].mxu0 %vm378_vm0, %v1885_v5  ;;  %v330_v13 = vrot.slane %v277_v11, 1  ;;  %v1904_v14 = vld [vmem:[%s1879_s8 + $0x30] sm:$0xff]  ;;  %v280_v15 = vld [vmem:[%s1879_s8 + $0x28] sm:$0x1]  ;;  %v1911_v17 = vld [vmem:[%s1879_s8 + $0x38] sm:$0xff] }
  0x23   : > { %v337_v16 = vrot.slane %v1904_v14, 1  ;;  %1495 = vmatprep.mubr.msk.f32.mxu0 %vm378_vm0, %v1904_v14  ;;  %1517 = vmatpush3.msra.mxu0 %v1342_v3  ;;  %v335_v18 = vrot.slane %v280_v15, 1  ;;  %v338_v21 = vrot.slane %v1911_v17, 1  ;;  %v1923_v22 = vsel %vm326_vm1, %v332_v7, %v333_v8  ;;  %v283_v23 = vld [vmem:[%s1879_s8 + $0x40] sm:$0x1]  ;;  %v1928_v24 = vld [vmem:[%s1879_s8 + $0x48] sm:$0xff] }
  0x24   : > { %v329_v19 = vsel %vm326_vm1, %v327_v10, %v328_v12  ;;  %v331_v20 = vsel %vm326_vm1, %v328_v12, %v330_v13  ;;  %v1939_v26 = vld [vmem:[%s1879_s8 + $0x50] sm:$0xff]  ;;  %v340_v27 = vrot.slane %v283_v23, 1  ;;  %v342_v28 = vrot.slane %v1928_v24, 1  ;;  %v1953_v31 = vld [vmem:[%s1879_s8 + $0x60] sm:$0xff]  ;;  %v286_v32 = vld [vmem:[%s1879_s8 + $0x58] sm:$0x1] }
  0x25   : > { %1440 = vmatprep.mubr.msk.f32.mxu1 %vm378_vm0, %v329_v19  ;;  %v1936_v25 = vsel %vm326_vm1, %v333_v8, %v335_v18  ;;  %v343_v29 = vrot.slane %v1939_v26, 1  ;;  %v1950_v30 = vsel %vm326_vm1, %v337_v16, %v338_v21  ;;  %v1968_v34 = vld [vmem:[%s1879_s8 + $0x68] sm:$0xff]  ;;  %v345_v35 = vrot.slane %v286_v32, 1  ;;  %v1974_v39 = vld [vmem:[%s1879_s8 + $0x78] sm:$0xff]  ;;  %v289_v40 = vld [vmem:[%s1879_s8 + $0x70] sm:$0x1] }
  0x26   : > { %1441 = vmatmul.mubr.msk.f32.vlgmr.msra.gmra.mrb[0].mxu1 %vm378_vm0, %v331_v20  ;;  %1496 = vmatmul.mubr.msk.f32.gmra.mrb[2].mxu0 %vm378_vm0, %v1911_v17  ;;  %v1963_v33 = vsel %vm326_vm1, %v338_v21, %v340_v27  ;;  %v347_v36 = vrot.slane %v1953_v31, 1  ;;  %v348_v37 = vrot.slane %v1968_v34, 1  ;;  %v1986_v42 = vld [vmem:[%s1879_s8 + $0x80] sm:$0xff]  ;;  %v350_v43 = vrot.slane %v289_v40, 1  ;;  %v1994_v47 = vld [vmem:[%s1879_s8 + $0x90] sm:$0xff]  ;;  %v2005_v50 = vld [vmem:[%s1879_s8 + $0x98] sm:$0xff] }
  0x27   : > { %1465 = vmatpush3.msra.mxu1 %v375_v2  ;;  %1443 = vmatprep.mubr.msk.f32.mxu1 %vm378_vm0, %v1923_v22  ;;  %v344_v38 = vsel %vm326_vm1, %v342_v28, %v343_v29  ;;  %v346_v41 = vsel %vm326_vm1, %v343_v29, %v345_v35  ;;  %v352_v44 = vrot.slane %v1974_v39, 1  ;;  %v353_v45 = vrot.slane %v1986_v42, 1  ;;  %v292_v48 = vld [vmem:[%s1879_s8 + $0x88] sm:$0x1]  ;;  %v295_v56 = vld [vmem:[%s1879_s8 + $0xa0] sm:$0x1] }
  0x28   : > { %1498 = vmatprep.mubr.msk.f32.mxu0 %vm378_vm0, %v1928_v24  ;;  %v349_v46 = vsel %vm326_vm1, %v347_v36, %v348_v37  ;;  %v351_v49 = vsel %vm326_vm1, %v348_v37, %v350_v43  ;;  %v355_v51 = vrot.slane %v292_v48, 1  ;;  %v357_v52 = vrot.slane %v1994_v47, 1  ;;  %v2011_v55 = vld [vmem:[%s1879_s8 + $0xa8] sm:$0xff]  ;;  %v297_v58 = vld [vmem:[%s1879_s8 + $0xb0] sm:$0xff]  ;;  %v299_v63 = vld [vmem:[%s2017_s27] sm:$0xff]  ;;  %s1360_s4 = sshll.u32 %s1746_s16, 1 }
  0x29   : > { %v358_v53 = vrot.slane %v2005_v50, 1  ;;  %v354_v54 = vsel %vm326_vm1, %v352_v44, %v353_v45  ;;  %v360_v59 = vrot.slane %v295_v56, 1  ;;  %v362_v60 = vrot.slane %v2011_v55, 1  ;;  %v298_v0 = vld [vmem:[%s1879_s8 + $0xb8] sm:$0x1]  ;;  %v300_v2 = vld [vmem:[%s2017_s27 + $0x8] sm:$0xff]  ;;  %s1174_s5 = sadd.s32 %s1742_s15, %s1360_s4 }
  0x2a   : > { %1444 = vmatmul.mubr.msk.f32.gmra.mrb[2].mxu1 %vm378_vm0, %v1936_v25  ;;  %1499 = vmatmul.mubr.msk.f32.gmra.mrb[4].mxu0 %vm378_vm0, %v1939_v26  ;;  %v356_v57 = vsel %vm326_vm1, %v353_v45, %v355_v51  ;;  %v363_v61 = vrot.slane %v297_v58, 1  ;;  %v365_v3 = vrot.slane %v298_v0, 1  ;;  %s1361_s7 = sshll.u32 %s1174_s5, 5  ;;  %s240_s8 = scalar_lea.vmem [#allocation2], %s1287_s29 }
  0x2b   : > { %1446 = vmatprep.mubr.msk.f32.mxu1 %vm378_vm0, %v1950_v30  ;;  %1501 = vmatprep.mubr.msk.f32.mxu0 %vm378_vm0, %v1953_v31  ;;  %v359_v62 = vsel %vm326_vm1, %v357_v52, %v358_v53  ;;  %v361_v1 = vsel %vm326_vm1, %v358_v53, %v360_v59  ;;  %s1178_s9 = sshll.u32 %s240_s8, 4  ;;  %s2135_s11 = scalar_lea.hbm %s2191_s3, %s1361_s7  ;;  %s2137_s9 = int_to_ptr.vmem [resolvable:$true] %s1178_s9 }
  0x2c   : > { %v364_v7 = vsel %vm326_vm1, %v362_v60, %v363_v61  ;;  %v366_v8 = vsel %vm326_vm1, %v363_v61, %v365_v3  ;;  %s1163_s15 = scalar_lea.sflag [#allocation3], %s238_s28  ;;  %s1664_s16 = scalar_lea.vmem %s2137_s9, 32 }
  0x2d   : > { %p1665_p1 = scmp.ne.s32.totalorder %s2137_s9, %s1664_s16  ;;  %s1760_s20 = smov [#allocation2]  }
  0x2e   : > { %1447 = vmatmul.mubr.msk.f32.gmra.mrb[4].mxu1 %vm378_vm0, %v1963_v33  ;;  %1502 = vmatmul.mubr.msk.f32.gmra.mrb[6].mxu0 %vm378_vm0, %v1968_v34  ;;  %s1668_s21 = sshll.u32 %s1760_s20, 4  ;;  %s1669_s21 = int_to_ptr.vmem [resolvable:$false] %s1668_s21 }
  0x2f   : > { %1449 = vmatprep.mubr.msk.f32.mxu1 %vm378_vm0, %v344_v38  ;;  %1504 = vmatprep.mubr.msk.f32.mxu0 %vm378_vm0, %v1974_v39  ;;  %p1666_p2 = pnand %p1665_p1, %p1832_p3  ;;  %s1670_s24 = scalar_lea.vmem %s1669_s21, 64 }
  0x30   : > { %p1671_p5 = scmp.lt.s32.totalorder %s2137_s9, %s1669_s21  ;;  %p1672_p6 = scmp.lt.s32.totalorder %s1670_s24, %s1664_s16 }
  0x31   : > { %p1667_p4 = pneg %p1666_p2 }
  0x32   : > { %1450 = vmatmul.mubr.msk.f32.gmra.mrb[6].mxu1 %vm378_vm0, %v346_v41  ;;  %1505 = vmatmul.mubr.msk.f32.gmra.mrb[8].mxu0 %vm378_vm0, %v1986_v42  ;;  %p1673_p7 = por %p1672_p6, %p1671_p5 }
  0x33   : > { %1452 = vmatprep.mubr.msk.f32.mxu1 %vm378_vm0, %v349_v46  ;;  %1507 = vmatprep.mubr.msk.f32.mxu0 %vm378_vm0, %v1994_v47 }
  0x34   : > { %p1674_p9 = pnand %p1673_p7, %p1667_p4 }
  0x36   : > { %1453 = vmatmul.mubr.msk.f32.gmra.mrb[8].mxu1 %vm378_vm0, %v351_v49  ;;  %1508 = vmatmul.mubr.msk.f32.gmra.mrb[10].mxu0 %vm378_vm0, %v2005_v50 }
  0x37   : > { %1455 = vmatprep.mubr.msk.f32.mxu1 %vm378_vm0, %v354_v54  ;;  %1510 = vmatprep.mubr.msk.f32.mxu0 %vm378_vm0, %v2011_v55 }
  0x3a   : > { %1456 = vmatmul.mubr.msk.f32.gmra.mrb[10].mxu1 %vm378_vm0, %v356_v57  ;;  %1511 = vmatmul.mubr.msk.f32.gmra.mrb[12].mxu0 %vm378_vm0, %v297_v58 }
  0x3b   : > { %1458 = vmatprep.mubr.msk.f32.mxu1 %vm378_vm0, %v359_v62  ;;  %1513 = vmatprep.mubr.msk.f32.mxu0 %vm378_vm0, %v299_v63 }
  0x3e   : > { %1459 = vmatmul.mubr.msk.f32.gmra.mrb[12].mxu1 %vm378_vm0, %v361_v1  ;;  %1514 = vmatmul.mubr.msk.f32.gmra.mrb[14].mxu0 %vm378_vm0, %v300_v2 }
  0x3f   : > { %1461 = vmatprep.mubr.msk.f32.mxu1 %vm378_vm0, %v364_v7  ;;  %1518 = vmatprep.mubr.msk.f32.mxu0 %vm378_vm0, %v1923_v22 }
  0x42   : > { %1462 = vmatmul.mubr.msk.f32.gmra.mrb[14].mxu1 %vm378_vm0, %v366_v8  ;;  %1519 = vmatmul.mubr.msk.f32.vlgmr.msra.gmra.mrb[0].mxu0 %vm378_vm0, %v1936_v25 }
  0x43   : > { %1466 = vmatprep.mubr.msk.f32.mxu1 %vm378_vm0, %v1888_v6  ;;  %1521 = vmatprep.mubr.msk.f32.mxu0 %vm378_vm0, %v1950_v30  ;;  %v371_v6 = vrot.slane %v300_v2, 1 }
  0x46   : > { %1467 = vmatmul.mubr.msk.f32.vlgmr.msra.gmra.mrb[0].mxu1 %vm378_vm0, %v1896_v9  ;;  %1522 = vmatmul.mubr.msk.f32.gmra.mrb[2].mxu0 %vm378_vm0, %v1963_v33 }
  0x47   : > { %1469 = vmatprep.mubr.msk.f32.mxu1 %vm378_vm0, %v1882_v4  ;;  %1524 = vmatprep.mubr.msk.f32.mxu0 %vm378_vm0, %v344_v38  ;;  %v301_v4 = vld [vmem:[%s2017_s27 + $0x10] sm:$0x1] }
  0x48   : > { %v373_v9 = vrot.slane %v301_v4, 1 }
  0x4a   : > { %1470 = vmatmul.mubr.msk.f32.gmra.mrb[2].mxu1 %vm378_vm0, %v1885_v5  ;;  %1525 = vmatmul.mubr.msk.f32.gmra.mrb[4].mxu0 %vm378_vm0, %v346_v41  ;;  %v370_v5 = vrot.slane %v299_v63, 1  ;;  %v374_v11 = vsel %vm326_vm1, %v371_v6, %v373_v9 }
  0x4b   : > { %1472 = vmatprep.mubr.msk.f32.mxu1 %vm378_vm0, %v1904_v14  ;;  %1527 = vmatprep.mubr.msk.f32.mxu0 %vm378_vm0, %v349_v46 }
  0x4c   : > { %v372_v10 = vsel %vm326_vm1, %v370_v5, %v371_v6 }
  0x4e   : > { %1473 = vmatmul.mubr.msk.f32.gmra.mrb[4].mxu1 %vm378_vm0, %v1911_v17  ;;  %1528 = vmatmul.mubr.msk.f32.gmra.mrb[6].mxu0 %vm378_vm0, %v351_v49 }
  0x4f   : > { %1475 = vmatprep.mubr.msk.f32.mxu1 %vm378_vm0, %v1928_v24  ;;  %1530 = vmatprep.mubr.msk.f32.mxu0 %vm378_vm0, %v354_v54 }
  0x52   : > { %1476 = vmatmul.mubr.msk.f32.gmra.mrb[6].mxu1 %vm378_vm0, %v1939_v26  ;;  %1531 = vmatmul.mubr.msk.f32.gmra.mrb[8].mxu0 %vm378_vm0, %v356_v57 }
  0x53   : > { %1478 = vmatprep.mubr.msk.f32.mxu1 %vm378_vm0, %v1953_v31  ;;  %1533 = vmatprep.mubr.msk.f32.mxu0 %vm378_vm0, %v359_v62 }
  0x56   : > { %1479 = vmatmul.mubr.msk.f32.gmra.mrb[8].mxu1 %vm378_vm0, %v1968_v34  ;;  %1534 = vmatmul.mubr.msk.f32.gmra.mrb[10].mxu0 %vm378_vm0, %v361_v1 }
  0x57   : > { %1481 = vmatprep.mubr.msk.f32.mxu1 %vm378_vm0, %v1974_v39  ;;  %1536 = vmatprep.mubr.msk.f32.mxu0 %vm378_vm0, %v364_v7 }
  0x5a   : > { %1482 = vmatmul.mubr.msk.f32.gmra.mrb[10].mxu1 %vm378_vm0, %v1986_v42  ;;  %1537 = vmatmul.mubr.msk.f32.gmra.mrb[12].mxu0 %vm378_vm0, %v366_v8 }
  0x5b   : > { %1484 = vmatprep.mubr.msk.f32.mxu1 %vm378_vm0, %v1994_v47  ;;  %1539 = vmatprep.mubr.msk.f32.mxu0 %vm378_vm0, %v372_v10 }
  0x5e   : > { %1485 = vmatmul.mubr.msk.f32.gmra.mrb[12].mxu1 %vm378_vm0, %v2005_v50  ;;  %1540 = vmatmul.mubr.msk.f32.gmra.mrb[14].mxu0 %vm378_vm0, %v374_v11 }
  0x5f   : > { %1487 = vmatprep.mubr.msk.f32.mxu1 %vm378_vm0, %v2011_v55 }
  0x62   : > { %1488 = vmatmul.mubr.msk.f32.gmra.mrb[14].mxu1 %vm378_vm0, %v297_v58 }
 0x115   : > { %v1520_v12 = vpop.f32.mrb[0].mxu0 }
 0x116   : > { %v972_v13 = vpop.f32.mrb[1].mxu0 }
 0x119   : > { %v1468_v14 = vpop.f32.mrb[0].mxu1  ;;  %v1523_v15 = vpop.f32.mrb[2].mxu0 }
 0x11a   : > { %v1542_v16 = vadd.f32 %v1520_v12, %v1468_v14  ;;  %v654_v17 = vpop.f32.mrb[1].mxu1  ;;  %v982_v18 = vpop.f32.mrb[3].mxu0 }
 0x11b   : > { %v1543_v19 = vadd.f32 %v972_v13, %v654_v17 }
 0x11c   : > { %v1069_v20 = vsel %vm1067_vm2, %v1542_v16, 0.0  ;;  %v1106_v21 = vmul.f32 %v1542_v16, %v1542_v16 }
 0x11d   : > { %v1068_v22 = vsel %vm1067_vm2, %v1543_v19, 0.0  ;;  %v1105_v23 = vmul.f32 %v1543_v19, %v1543_v19  ;;  %v1471_v24 = vpop.f32.mrb[2].mxu1  ;;  %v1526_v25 = vpop.f32.mrb[4].mxu0 }
 0x11e   : > { %v1122_v26 = vsel %vm1067_vm2, %v1106_v21, 0.0  ;;  %v1070_v27 = vadd.f32 %v1069_v20, %v1068_v22  ;;  %v1544_v28 = vadd.f32 %v1523_v15, %v1471_v24  ;;  %v664_v29 = vpop.f32.mrb[3].mxu1  ;;  %v992_v30 = vpop.f32.mrb[5].mxu0 }
 0x11f   : > { %v1121_v31 = vsel %vm1067_vm2, %v1105_v23, 0.0  ;;  %v1545_v32 = vadd.f32 %v982_v18, %v664_v29 }
 0x120   : > { %v1123_v33 = vadd.f32 %v1122_v26, %v1121_v31  ;;  %v1108_v34 = vmul.f32 %v1544_v28, %v1544_v28  ;;  %v1073_v43 = vsel %vm1067_vm2, %v1544_v28, 0.0 }
 0x121   : > { %v1071_v35 = vsel %vm1067_vm2, %v1545_v32, 0.0  ;;  %v1107_v36 = vmul.f32 %v1545_v32, %v1545_v32  ;;  %v1474_v37 = vpop.f32.mrb[4].mxu1  ;;  %v1529_v38 = vpop.f32.mrb[6].mxu0 }
 0x122   : > { %v1072_v39 = vadd.f32 %v1071_v35, %v1070_v27  ;;  %v1546_v40 = vadd.f32 %v1526_v25, %v1474_v37  ;;  %v674_v41 = vpop.f32.mrb[5].mxu1  ;;  %v1002_v42 = vpop.f32.mrb[7].mxu0  ;;  %v1126_v48 = vsel %vm1067_vm2, %v1108_v34, 0.0 }
 0x123   : > { %v1124_v44 = vsel %vm1067_vm2, %v1107_v36, 0.0  ;;  %v1547_v45 = vadd.f32 %v992_v30, %v674_v41 }
 0x124   : > { %v1125_v46 = vadd.f32 %v1124_v44, %v1123_v33  ;;  %v1074_v47 = vadd.f32 %v1073_v43, %v1072_v39  ;;  %v1110_v49 = vmul.f32 %v1546_v40, %v1546_v40  ;;  %v1077_v59 = vsel %vm1067_vm2, %v1546_v40, 0.0 }
 0x125   : > { %v1075_v50 = vsel %vm1067_vm2, %v1547_v45, 0.0  ;;  %v1109_v51 = vmul.f32 %v1547_v45, %v1547_v45  ;;  %v1477_v52 = vpop.f32.mrb[6].mxu1  ;;  %v1532_v53 = vpop.f32.mrb[8].mxu0 }
 0x126   : > { %v1076_v54 = vadd.f32 %v1075_v50, %v1074_v47  ;;  %v1127_v55 = vadd.f32 %v1126_v48, %v1125_v46  ;;  %v1548_v56 = vadd.f32 %v1529_v38, %v1477_v52  ;;  %v684_v57 = vpop.f32.mrb[7].mxu1  ;;  %v1012_v58 = vpop.f32.mrb[9].mxu0  ;;  %v1130_v0 = vsel %vm1067_vm2, %v1110_v49, 0.0 }
 0x127   : > { %v1128_v60 = vsel %vm1067_vm2, %v1109_v51, 0.0  ;;  %v1549_v61 = vadd.f32 %v1002_v42, %v684_v57 }
 0x128   : > { %v1129_v62 = vadd.f32 %v1128_v60, %v1127_v55  ;;  %v1078_v63 = vadd.f32 %v1077_v59, %v1076_v54  ;;  %v1112_v1 = vmul.f32 %v1548_v56, %v1548_v56  ;;  %v1081_v11 = vsel %vm1067_vm2, %v1548_v56, 0.0 }
 0x129   : > { %v1079_v2 = vsel %vm1067_vm2, %v1549_v61, 0.0  ;;  %v1111_v3 = vmul.f32 %v1549_v61, %v1549_v61  ;;  %v1480_v7 = vpop.f32.mrb[8].mxu1  ;;  %v1535_v8 = vpop.f32.mrb[10].mxu0 }
 0x12a   : > { %v1080_v4 = vadd.f32 %v1079_v2, %v1078_v63  ;;  %v1131_v5 = vadd.f32 %v1130_v0, %v1129_v62  ;;  %v1550_v6 = vadd.f32 %v1532_v53, %v1480_v7  ;;  %v694_v9 = vpop.f32.mrb[9].mxu1  ;;  %v1022_v10 = vpop.f32.mrb[11].mxu0  ;;  %v1134_v16 = vsel %vm1067_vm2, %v1112_v1, 0.0 }
 0x12b   : > { %v1132_v12 = vsel %vm1067_vm2, %v1111_v3, 0.0  ;;  %v1551_v13 = vadd.f32 %v1012_v58, %v694_v9 }
 0x12c   : > { %v1133_v14 = vadd.f32 %v1132_v12, %v1131_v5  ;;  %v1082_v15 = vadd.f32 %v1081_v11, %v1080_v4  ;;  %v1114_v17 = vmul.f32 %v1550_v6, %v1550_v6  ;;  %v1085_v27 = vsel %vm1067_vm2, %v1550_v6, 0.0 }
 0x12d   : > { %v1083_v18 = vsel %vm1067_vm2, %v1551_v13, 0.0  ;;  %v1113_v19 = vmul.f32 %v1551_v13, %v1551_v13  ;;  %v1483_v20 = vpop.f32.mrb[10].mxu1  ;;  %v1538_v21 = vpop.f32.mrb[12].mxu0 }
 0x12e   : > { %v1084_v22 = vadd.f32 %v1083_v18, %v1082_v15  ;;  %v1135_v23 = vadd.f32 %v1134_v16, %v1133_v14  ;;  %v1552_v24 = vadd.f32 %v1535_v8, %v1483_v20  ;;  %v704_v25 = vpop.f32.mrb[11].mxu1  ;;  %v1032_v26 = vpop.f32.mrb[13].mxu0  ;;  %v1138_v32 = vsel %vm1067_vm2, %v1114_v17, 0.0 }
 0x12f   : > { %v1136_v28 = vsel %vm1067_vm2, %v1113_v19, 0.0  ;;  %v1553_v29 = vadd.f32 %v1022_v10, %v704_v25 }
 0x130   : > { %v1137_v30 = vadd.f32 %v1136_v28, %v1135_v23  ;;  %v1086_v31 = vadd.f32 %v1085_v27, %v1084_v22  ;;  %v1116_v33 = vmul.f32 %v1552_v24, %v1552_v24  ;;  %v1089_v43 = vsel %vm1067_vm2, %v1552_v24, 0.0 }
 0x131   : > { %v1087_v34 = vsel %vm1067_vm2, %v1553_v29, 0.0  ;;  %v1115_v35 = vmul.f32 %v1553_v29, %v1553_v29  ;;  %v1486_v36 = vpop.f32.mrb[12].mxu1  ;;  %v1541_v37 = vpop.f32.mrb[14].mxu0 }
 0x132   : > { %v1088_v38 = vadd.f32 %v1087_v34, %v1086_v31  ;;  %v1139_v39 = vadd.f32 %v1138_v32, %v1137_v30  ;;  %v1554_v40 = vadd.f32 %v1538_v21, %v1486_v36  ;;  %v714_v41 = vpop.f32.mrb[13].mxu1  ;;  %v1042_v42 = vpop.f32.mrb[15].mxu0  ;;  %v1142_v48 = vsel %vm1067_vm2, %v1116_v33, 0.0 }
 0x133   : > { %v1140_v44 = vsel %vm1067_vm2, %v1115_v35, 0.0  ;;  %v1555_v45 = vadd.f32 %v1032_v26, %v714_v41 }
 0x134   : > { %v1141_v46 = vadd.f32 %v1140_v44, %v1139_v39  ;;  %v1090_v47 = vadd.f32 %v1089_v43, %v1088_v38  ;;  %v1118_v49 = vmul.f32 %v1554_v40, %v1554_v40  ;;  %v1093_v57 = vsel %vm1067_vm2, %v1554_v40, 0.0 }
 0x135   : > { %v1091_v50 = vsel %vm1067_vm2, %v1555_v45, 0.0  ;;  %v1117_v51 = vmul.f32 %v1555_v45, %v1555_v45  ;;  %v1489_v52 = vpop.f32.mrb[14].mxu1 }
 0x136   : > { %v1092_v53 = vadd.f32 %v1091_v50, %v1090_v47  ;;  %v1143_v54 = vadd.f32 %v1142_v48, %v1141_v46  ;;  %v1556_v55 = vadd.f32 %v1541_v37, %v1489_v52  ;;  %v724_v56 = vpop.f32.mrb[15].mxu1  ;;  %v1146_v62 = vsel %vm1067_vm2, %v1118_v49, 0.0 }
 0x137   : > { %v1144_v58 = vsel %vm1067_vm2, %v1117_v51, 0.0  ;;  %v1557_v59 = vadd.f32 %v1042_v42, %v724_v56 }
 0x138   : > { %v1145_v60 = vadd.f32 %v1144_v58, %v1143_v54  ;;  %v1094_v61 = vadd.f32 %v1093_v57, %v1092_v53  ;;  %v1120_v63 = vmul.f32 %v1556_v55, %v1556_v55  ;;  %v1097_v7 = vsel %vm1067_vm2, %v1556_v55, 0.0 }
 0x139   : > { %v1095_v0 = vsel %vm1067_vm2, %v1557_v59, 0.0  ;;  %v1119_v1 = vmul.f32 %v1557_v59, %v1557_v59 }
 0x13a   : > { %v1096_v2 = vadd.f32 %v1095_v0, %v1094_v61  ;;  %v1147_v3 = vadd.f32 %v1146_v62, %v1145_v60  ;;  %v1150_v6 = vsel %vm1067_vm2, %v1120_v63, 0.0 }
 0x13b   : > { %v1148_v8 = vsel %vm1067_vm2, %v1119_v1, 0.0 }
 0x13c   : > { %v1098_v4 = vadd.f32 %v1097_v7, %v1096_v2  ;;  %v1149_v5 = vadd.f32 %v1148_v8, %v1147_v3 }
 0x13e   : > { %v1099_v9 = vrot.slane %v1098_v4, 4  ;;  %v1151_v10 = vadd.f32 %v1150_v6, %v1149_v5 }
 0x140   : > { %v1100_v11 = vadd.f32 %v1099_v9, %v1098_v4  ;;  %v1152_v12 = vrot.slane %v1151_v10, 4 }
 0x142   : > { %v1101_v13 = vrot.slane %v1100_v11, 2  ;;  %v1153_v14 = vadd.f32 %v1152_v12, %v1151_v10 }
 0x144   : > { %v1102_v15 = vadd.f32 %v1101_v13, %v1100_v11  ;;  %v1154_v16 = vrot.slane %v1153_v14, 2 }
 0x146   : > { %v1103_v17 = vrot.slane %v1102_v15, 1  ;;  %v1155_v18 = vadd.f32 %v1154_v16, %v1153_v14 }
 0x148   : > { %v1156_v19 = vrot.slane %v1155_v18, 1  ;;  %v1104_v20 = vadd.f32 %v1103_v17, %v1102_v15 }
 0x14a   : > { %v1157_v21 = vadd.f32 %v1156_v19, %v1155_v18 }
 0x14c   : > { %v1159_v22 = vsel %vm1158_vm3, %v1104_v20, %v1157_v21 }
 0x14d   : > { %1161 = vst.msk [vmem:[%s240_s8] sm:$0x3] %vm1160_vm4, %v1159_v22 }
 0x14e   : > { %1677 = shalt.err (!%p1674_p9)
}
 0x14f   : > { %s1678_s27 = scalar_lea.hbm %s2135_s11, 32  ;;  %s1682_s4 = scalar_lea.hbm %s2191_s3, 128 }
 0x150   : > { %p1679_p10 = scmp.ne.s32.totalorder %s2135_s11, %s1678_s27  ;;  %p1683_p13 = scmp.lt.u32.totalorder %s2135_s11, %s2191_s3 }
 0x151   : > { %p1684_p0 = scmp.lt.u32.totalorder %s1682_s4, %s1678_s27  ;;  %p1686_p2 = scmp.lt.u32.totalorder %s1678_s27, %s2135_s11 }
 0x152   : > { %p1680_p11 = pnand %p1679_p10, %p1832_p3 }
 0x153   : > { %p1685_p1 = por %p1684_p0, %p1683_p13 }
 0x154   : > { %p1681_p12 = pneg %p1680_p11 }
 0x155   : > { %p1687_p4 = por %p1686_p2, %p1685_p1 }
 0x157   : > { %p1688_p5 = pnand %p1687_p4, %p1681_p12 }
 0x159   : > { %1691 = shalt.err (!%p1688_p5)
}
 0x15a   : > { %1593 = dma.vmem_to_hbm [thread:$0]  (%p1832_p3), %s2137_s9, 32, %s2135_s11, %s1163_s15  }
 0x15b PF: > { %p1599_p6 = scmp.ge.s32.totalorder %s1758_s19, 2  ;;  %s1190_s8 = sand.u32 1, %s1730_s12  }
 0x15c   : > { %s1191_s10 = scalar_lea.sflag [#allocation3], %s1190_s8 }
 0x15d   : > { %p1596_p7 = pnand %p1599_p6, %p1841_p8 }
 0x15f   : > { %1725 = dma.done.wait (!%p1596_p7), %s1191_s10, 32  }
 0x160   : > { %1727 = vsyncadd (!%p1596_p7), %s1191_s10, 4294967264  ;;  %s16_s19 = sadd.s32 1, %s1758_s19   ;;  %s2195_s12 = smov %s1734_s13 }
 0x161   : > { %p13_p9 = scmp.ge.s32.totalorder %s16_s19, 6   ;;  %s2196_s13 = smov %s1738_s14 }
 0x162   : > { %s2197_s14 = smov %s1850_s30  ;;  %s2198_s15 = smov %s1750_s17 }
 0x163   : > { %s2199_s16 = smov %s1754_s18  ;;  %s2200_s17 = smov %s2203_s22 }
 0x164   : > { %s2201_s18 = smov %s2207_s23  ;;  %15 = sbr.rel (!%p13_p9) target bundleno = 5 (0x5), region = 73 }
 0x16b   :  { %1196 = vsyncpa [#allocation3], 1 }
 0x16c   :  { %1198 = vsyncpa [#allocation3 + $0x1], 1 }

</bundles_post_ra>
